<compile_context>
chip_gen: v6e
topology: v6e:2x2x1
jax: 0.10.0
libtpu: 0.0.40
codegen_flags: <defaults>
</compile_context>

<pallas_src>
import math
from functools import partial

import jax
import jax.numpy as jnp
from jax.experimental import pallas as pl
from jax.experimental.pallas import tpu as pltpu

_LANE = 128            # vreg lane width
_SUBLANE = 8           # vreg sublane count (f32)
_MIN_ROWS_FOR_SPLIT = 256   # split into >=2 grid steps (v7x megacore) above this


def _round_up(x, m):
    return (x + m - 1) // m * m


# --------------------------------------------------------------------------
# Kernel
# --------------------------------------------------------------------------
def _actor_mlp_kernel(x_ref, p_ref, out_ref, *, k_pad, c_pad, n_output):
    """relu(x W1 + b1) -> relu(. W2 + b2) -> . W3 + b3 on padded tiles.

    p_ref packs, row-wise and 8-row aligned:
        rows [0, k_pad)              : W1  (k_pad, C)   zero-padded
        rows [k_pad, k_pad+C)        : W2  (C, C)       zero-padded
        rows [k_pad+C, k_pad+2C)     : W3  (C, C)       zero-padded
        rows [k_pad+2C, k_pad+2C+8)  : bias tile (8, C): row0=b1, row1=b2, row2=b3
    Zero padding keeps every padded activation lane exactly 0.
    Only the first n_output columns of the final matmul are stored back to HBM.
    """
    x = x_ref[...]                                   # (TB, k_pad) f32

    r0 = 0
    w1 = p_ref[r0:r0 + k_pad, :]                     # (k_pad, C)
    r0 += k_pad
    w2 = p_ref[r0:r0 + c_pad, :]                     # (C, C)
    r0 += c_pad
    w3 = p_ref[r0:r0 + c_pad, :]                     # (C, C)
    r0 += c_pad
    b_tile = p_ref[r0:r0 + _SUBLANE, :]              # (8, C) full tile
    b1 = b_tile[0:1, :]
    b2 = b_tile[1:2, :]
    b3 = b_tile[2:3, :]

    h1 = jnp.maximum(
        jnp.dot(x, w1, preferred_element_type=jnp.float32) + b1, 0.0)
    h2 = jnp.maximum(
        jnp.dot(h1, w2, preferred_element_type=jnp.float32) + b2, 0.0)
    a = jnp.dot(h2, w3, preferred_element_type=jnp.float32) + b3    # (TB, C)
    # Narrow store: last block dim == full output array dim (n_output), so
    # only the real output columns ever hit HBM.
    out_ref[...] = a[:, :n_output].astype(out_ref.dtype)


# --------------------------------------------------------------------------
# Wrapper
# --------------------------------------------------------------------------
@partial(jax.jit, static_argnames=("n_output", "block_batch"))
def actor_network_forward(state, packed_params, *, n_output, block_batch=512):
    """state: (batch, 1, n_input) or (batch, n_input). Returns (batch, n_output) f32."""
    # Glue: torch.squeeze(state, 1).float()  (fused by XLA inside this jit)
    if state.ndim == 3 and state.shape[1] == 1:
        state = jnp.squeeze(state, axis=1)
    x = state.astype(jnp.float32)

    batch, n_input = x.shape
    c_pad = packed_params.shape[1]                           # lane-padded feature width
    k_pad = packed_params.shape[0] - 2 * c_pad - _SUBLANE    # sublane-padded input width
    assert k_pad >= n_input, (k_pad, n_input)
    assert 0 < n_output <= c_pad, (n_output, c_pad)

    # --- batch tiling -------------------------------------------------------
    # n_steps = ceil(batch / block_batch); force >=2 steps when the batch is
    # large enough that both v7x TensorCores should get work; pick tb so that
    # padding waste is < 8 rows per step. Small batches -> one step, tb=b_pad.
    n_steps = max(1, -(-batch // block_batch))
    if batch >= _MIN_ROWS_FOR_SPLIT and n_steps < 2:
        n_steps = 2
    tb = max(_SUBLANE, _round_up(-(-batch // n_steps), _SUBLANE))
    b_pad = n_steps * tb

    # Zero-pad batch rows (to n_steps*tb) and input lanes (to k_pad).
    # Fused with the cast above; zero rows/cols contribute nothing.
    x = jnp.pad(x, ((0, b_pad - batch), (0, k_pad - n_input)))

    kernel = partial(_actor_mlp_kernel, k_pad=k_pad, c_pad=c_pad,
                     n_output=n_output)

    flops = 2 * b_pad * c_pad * (k_pad + 2 * c_pad)
    bytes_accessed = 4 * (b_pad * k_pad + packed_params.size + b_pad * n_output)

    out = pl.pallas_call(
        kernel,
        out_shape=jax.ShapeDtypeStruct((b_pad, n_output), jnp.float32),
        grid=(n_steps,),
        in_specs=[
            # Activations stream through VMEM, one (tb, k_pad) tile per step.
            pl.BlockSpec((tb, k_pad), lambda i: (i, 0)),
            # Packed params: constant index_map -> DMA'd once, resident in VMEM.
            pl.BlockSpec(packed_params.shape, lambda i: (0, 0)),
        ],
        # Narrow output block; last dim equals the full array dim so only the
        # real n_output columns are written back to HBM.
        out_specs=pl.BlockSpec((tb, n_output), lambda i: (i, 0)),
        compiler_params=pltpu.CompilerParams(
            dimension_semantics=("parallel",),
        ),
        cost_estimate=pl.CostEstimate(
            flops=flops, transcendentals=0, bytes_accessed=bytes_accessed),
    )(x, packed_params)

    # Only a tiny row slice remains (batch*n_output*4 bytes); it's a no-op when
    # the batch is already tile-aligned.
    return out if b_pad == batch else out[:batch]


# --------------------------------------------------------------------------
# Parameter init (mirrors the torch module) + one-time packing
# --------------------------------------------------------------------------
def init_actor_params(key, n_input, n_features, n_output):
    """xavier_uniform(gain=sqrt(2)) on all three weights (as in the torch spec),
    PyTorch-default uniform bias. Weights stored pre-transposed (fan_in, fan_out)."""
    def xavier(k, fan_in, fan_out):
        gain = math.sqrt(2.0)
        limit = gain * math.sqrt(6.0 / (fan_in + fan_out))
        return jax.random.uniform(k, (fan_in, fan_out), jnp.float32,
                                  minval=-limit, maxval=limit)

    def bias(k, fan_in, fan_out):
        bound = 1.0 / math.sqrt(fan_in)
        return jax.random.uniform(k, (1, fan_out), jnp.float32,
                                  minval=-bound, maxval=bound)

    k1, k2, k3, k4, k5, k6 = jax.random.split(key, 6)
    return {
        "w1": xavier(k1, n_input, n_features),
        "b1": bias(k2, n_input, n_features),
        "w2": xavier(k3, n_features, n_features),
        "b2": bias(k4, n_features, n_features),
        "w3": xavier(k5, n_features, n_output),
        "b3": bias(k6, n_features, n_output),
    }


def pack_actor_params(params, n_input, n_features, n_output):
    """Pack W1/W2/W3/b1/b2/b3 into one lane-dense (K + 2C + 8, C) f32 buffer,
    zero-padded, with every sub-block starting on an 8-row boundary."""
    k_pad = _round_up(n_input, _SUBLANE)
    c_pad = max(_round_up(n_features, _LANE), _round_up(n_output, _LANE))

    def pad2d(w, rows, cols):
        out = jnp.zeros((rows, cols), jnp.float32)
        return out.at[:w.shape[0], :w.shape[1]].set(w.astype(jnp.float32))

    w1 = pad2d(params["w1"], k_pad, c_pad)
    w2 = pad2d(params["w2"], c_pad, c_pad)
    w3 = pad2d(params["w3"], c_pad, c_pad)

    bias_tile = jnp.zeros((_SUBLANE, c_pad), jnp.float32)
    bias_tile = bias_tile.at[0, :n_features].set(
        params["b1"].reshape(-1).astype(jnp.float32))
    bias_tile = bias_tile.at[1, :n_features].set(
        params["b2"].reshape(-1).astype(jnp.float32))
    bias_tile = bias_tile.at[2, :n_output].set(
        params["b3"].reshape(-1).astype(jnp.float32))

    return jnp.concatenate([w1, w2, w3, bias_tile], axis=0)


# --------------------------------------------------------------------------
# Pure-JAX reference for correctness checking
# --------------------------------------------------------------------------
def _actor_reference(state, params):
    x = jnp.squeeze(state, axis=1).astype(jnp.float32) if state.ndim == 3 else state
    h1 = jnp.maximum(x @ params["w1"] + params["b1"], 0.0)
    h2 = jnp.maximum(h1 @ params["w2"] + params["b2"], 0.0)
    return h2 @ params["w3"] + params["b3"]


if __name__ == "__main__":
    key = jax.random.PRNGKey(0)
    k_param, k_state1, k_state2 = jax.random.split(key, 3)

    n_input = 4       # input_shape[-1]
    n_features = 32
    n_output = 2      # output_shape[0]

    raw_params = init_actor_params(k_param, n_input, n_features, n_output)
    packed_params = pack_actor_params(raw_params, n_input, n_features, n_output)

    # Case 1: small batch -> single grid step (tb == b_pad), no padding waste.
    state_small = jax.random.normal(k_state1, (24, 1, n_input), dtype=jnp.float32)
    out_small = jax.block_until_ready(
        actor_network_forward(state_small, packed_params, n_output=n_output))
    assert out_small.shape == (24, n_output), out_small.shape
    assert out_small.dtype == jnp.float32, out_small.dtype
    ref_small = _actor_reference(state_small, raw_params)
    err_small = float(jnp.max(jnp.abs(out_small - ref_small)))
    assert jnp.allclose(out_small, ref_small, atol=1e-5, rtol=1e-5), err_small

    # Case 2: larger batch -> >=2 pipelined grid steps (v7x megacore path) with
    # a few padded rows that get sliced off.
    state_big = jax.random.normal(k_state2, (300, 1, n_input), dtype=jnp.float32)
    out_big = jax.block_until_ready(
        actor_network_forward(state_big, packed_params, n_output=n_output))
    assert out_big.shape == (300, n_output), out_big.shape
    ref_big = _actor_reference(state_big, raw_params)
    err_big = float(jnp.max(jnp.abs(out_big - ref_big)))
    assert jnp.allclose(out_big, ref_big, atol=1e-5, rtol=1e-5), err_big

    print("KERNEL_OK")
</pallas_src>

<mosaic_0001>
module attributes {stable_mosaic.version = 11 : i64} {
  func.func @_actor_mlp_kernel(%arg0: i32, %arg1: memref<24x8xf32, #tpu.memory_space<vmem>>, %arg2: memref<272x128xf32, #tpu.memory_space<vmem>>, %arg3: memref<24x2xf32, #tpu.memory_space<vmem>>) attributes {dimension_semantics = [#tpu.dimension_semantics<parallel>], iteration_bounds = array<i64: 1>, scalar_prefetch = 0 : i64, scratch_operands = 0 : i64, tpu.core_type = #tpu.core_type<tc>, window_params = [{transform_indices = @transform_0, window_bounds = array<i64: 24, 8>}, {pipeline_mode = #tpu.pipeline_mode<synchronous>, transform_indices = @transform_1, window_bounds = array<i64: 272, 128>}, {transform_indices = @transform_2, window_bounds = array<i64: 24, 2>}]} {
    %c0 = arith.constant 0 : index
    %c0_0 = arith.constant 0 : index
    %0 = vector.load %arg1[%c0, %c0_0] : memref<24x8xf32, #tpu.memory_space<vmem>>, vector<24x8xf32>
    %c0_1 = arith.constant 0 : index
    %c0_2 = arith.constant 0 : index
    %1 = vector.load %arg2[%c0_1, %c0_2] : memref<272x128xf32, #tpu.memory_space<vmem>>, vector<8x128xf32>
    %c8 = arith.constant 8 : index
    %c0_3 = arith.constant 0 : index
    %2 = vector.load %arg2[%c8, %c0_3] : memref<272x128xf32, #tpu.memory_space<vmem>>, vector<128x128xf32>
    %c136 = arith.constant 136 : index
    %c0_4 = arith.constant 0 : index
    %3 = vector.load %arg2[%c136, %c0_4] : memref<272x128xf32, #tpu.memory_space<vmem>>, vector<128x128xf32>
    %c264 = arith.constant 264 : index
    %c0_5 = arith.constant 0 : index
    %4 = vector.load %arg2[%c264, %c0_5] : memref<272x128xf32, #tpu.memory_space<vmem>>, vector<8x128xf32>
    %5 = vector.extract_strided_slice %4 {offsets = [0, 0], sizes = [1, 128], strides = [1, 1]} : vector<8x128xf32> to vector<1x128xf32>
    %6 = vector.extract_strided_slice %4 {offsets = [1, 0], sizes = [1, 128], strides = [1, 1]} : vector<8x128xf32> to vector<1x128xf32>
    %7 = vector.extract_strided_slice %4 {offsets = [2, 0], sizes = [1, 128], strides = [1, 1]} : vector<8x128xf32> to vector<1x128xf32>
    %cst = arith.constant dense<0.000000e+00> : vector<24x128xf32>
    %8 = tpu.matmul %0, %1, %cst {dimension_numbers = #tpu.dot_dimension_numbers<[1], [0], [0], [1], [0, 0, 1, 1], [], []>} : vector<24x8xf32>, vector<8x128xf32>, vector<24x128xf32> -> vector<24x128xf32>
    %9 = vector.broadcast %5 : vector<1x128xf32> to vector<24x128xf32>
    %10 = arith.addf %8, %9 : vector<24x128xf32>
    %cst_6 = arith.constant 0.000000e+00 : f32
    %11 = vector.broadcast %cst_6 : f32 to vector<24x128xf32>
    %12 = arith.maximumf %10, %11 : vector<24x128xf32>
    %cst_7 = arith.constant dense<0.000000e+00> : vector<24x128xf32>
    %13 = tpu.matmul %12, %2, %cst_7 {dimension_numbers = #tpu.dot_dimension_numbers<[1], [0], [0], [1], [0, 0, 1, 1], [], []>} : vector<24x128xf32>, vector<128x128xf32>, vector<24x128xf32> -> vector<24x128xf32>
    %14 = vector.broadcast %6 : vector<1x128xf32> to vector<24x128xf32>
    %15 = arith.addf %13, %14 : vector<24x128xf32>
    %cst_8 = arith.constant 0.000000e+00 : f32
    %16 = vector.broadcast %cst_8 : f32 to vector<24x128xf32>
    %17 = arith.maximumf %15, %16 : vector<24x128xf32>
    %cst_9 = arith.constant dense<0.000000e+00> : vector<24x128xf32>
    %18 = tpu.matmul %17, %3, %cst_9 {dimension_numbers = #tpu.dot_dimension_numbers<[1], [0], [0], [1], [0, 0, 1, 1], [], []>} : vector<24x128xf32>, vector<128x128xf32>, vector<24x128xf32> -> vector<24x128xf32>
    %19 = vector.broadcast %7 : vector<1x128xf32> to vector<24x128xf32>
    %20 = arith.addf %18, %19 : vector<24x128xf32>
    %21 = vector.extract_strided_slice %20 {offsets = [0, 0], sizes = [24, 2], strides = [1, 1]} : vector<24x128xf32> to vector<24x2xf32>
    %c0_10 = arith.constant 0 : index
    %c0_11 = arith.constant 0 : index
    %22 = vector.load %arg3[%c0_10, %c0_11] : memref<24x2xf32, #tpu.memory_space<vmem>>, vector<24x2xf32>
    tpu.vector_store %arg3[%c0_10, %c0_11], %21 {strides = array<i32>} : memref<24x2xf32, #tpu.memory_space<vmem>>, vector<24x2xf32>,
    return
  }
  func.func @transform_0(%arg0: i32) -> (i32, i32) {
    %c0_i32 = arith.constant 0 : i32
    %c0_i32_0 = arith.constant 0 : i32
    return %arg0, %c0_i32 : i32, i32
  }
  func.func @transform_1(%arg0: i32) -> (i32, i32) {
    %c0_i32 = arith.constant 0 : i32
    %c0_i32_0 = arith.constant 0 : i32
    %c0_i32_1 = arith.constant 0 : i32
    return %c0_i32, %c0_i32_0 : i32, i32
  }
  func.func @transform_2(%arg0: i32) -> (i32, i32) {
    %c0_i32 = arith.constant 0 : i32
    %c0_i32_0 = arith.constant 0 : i32
    return %arg0, %c0_i32 : i32, i32
  }
}

</mosaic_0001>

<bundles_post_ra>
// kernel: actor_network_forward.1
= control target key start
LH: loop header
LB: loop body
LE: loop exit
PB: predicated region body
PF: predicated region fallthrough
CT: control target
= control target key end

     0   :  { %7 = vsyncpa [#allocation3], 0  ;;  %s504_s9 = smov [#allocation2]   ;;  %s599_s0 = inlined_call_operand.vmem [shape: f32[24,8], index: 0, kind: input, shape index: {}]   ;;  %s600_s1 = inlined_call_operand.hbm [shape: f32[272,128], index: 1, kind: input, shape index: {}]   ;;  %s601_s2 = inlined_call_operand.vmem [shape: f32[24,2], index: 2, kind: output, shape index: {}]  }
   0x1   :  { %s15_s10 = sshll.u32 %s504_s9, 4  ;;  %s16_s10 = int_to_ptr.vmem [resolvable:$true] %s15_s10 }
   0x2   :  { %s490_s11 = scalar_lea.vmem %s16_s10, 4352  ;;  %p495_p1 = scmp.lt.s32.totalorder %s16_s10, %s16_s10 }
   0x3   :  { %p491_p0 = scmp.ne.s32.totalorder %s16_s10, %s490_s11  ;;  %p496_p2 = scmp.lt.s32.totalorder %s490_s11, %s490_s11 }
   0x5   :  { %p497_p3 = por %p496_p2, %p495_p1 }
   0x7   :  { %p498_p4 = pnand %p497_p3, %p491_p0 }
   0x9   :  { %501 = shalt.err (!%p498_p4)
}
   0xa   :  { %s505_s12 = smov 128   ;;  %s506_s13 = smov 8  }
   0xb   :  { %21 = dma.hbm_to_vmem [thread:$0]  %s600_s1, 4352, %s16_s10, [#allocation3], %s505_s12, %s505_s12, %s506_s13  }
   0xc   :  { %502 = dma.done.wait [#allocation3], 4352  }
   0xd   :  { %503 = vsyncadd [#allocation3], 4294962944  ;;  %v507_v0 = vmov 0.0   ;;  %vm508_vm0 = vmmov 0   ;;  %vm66_vm1 = vcmask 64512   ;;  %v28_v1 = vld [vmem:[#allocation2] sm:$0xff]  ;;  %v62_v34 = vlaneseq }
   0xe   :  { %384 = vmatprep.subr.mxu0 %v507_v0  ;;  %386 = vmatprep.mubr.msk.f32.mxu0 %vm508_vm0, %v507_v0  ;;  %v25_v2 = vld [vmem:[%s599_s0] sm:$0xff]  ;;  %v43_v4 = vld [vmem:[#allocation2 + $0x78] sm:$0xff]  ;;  %v26_v5 = vld [vmem:[%s599_s0 + $0x8] sm:$0xff]  ;;  %vm330_vm2 = vcmask 15360  }
   0xf   :  { %395 = vmatprep.subr.mxu1 %v507_v0  ;;  %427 = vmatprep.mubr.msk.f32.mxu1 %vm508_vm0, %v507_v0  ;;  %v44_v3 = vld [vmem:[#allocation2 + $0x80] sm:$0xff]  ;;  %v42_v6 = vld [vmem:[#allocation2 + $0x70] sm:$0xff]  ;;  %v41_v7 = vld [vmem:[#allocation2 + $0x68] sm:$0xff]  ;;  %v63_v35 = vshrl.u32 %v62_v34, 7 }
  0x10   :  { %385 = vmatpush3.msra.mxu0 %v28_v1  ;;  %396 = vmatpush3.msra.mxu1 %v44_v3  ;;  %v27_v8 = vld [vmem:[%s599_s0 + $0x10] sm:$0xff]  ;;  %v40_v9 = vld [vmem:[#allocation2 + $0x60] sm:$0xff]  ;;  %v39_v10 = vld [vmem:[#allocation2 + $0x58] sm:$0xff] }
  0x11   :  { %387 = vmatmul.mubr.msk.f32.vlgmr.msra.gmra.mxu0 %vm66_vm1, %v25_v2  ;;  %397 = vmatprep.subr.mxu1 %v507_v0  ;;  %v38_v11 = vld [vmem:[#allocation2 + $0x50] sm:$0xff]  ;;  %v37_v12 = vld [vmem:[#allocation2 + $0x48] sm:$0xff]  ;;  %v36_v13 = vld [vmem:[#allocation2 + $0x40] sm:$0xff]  ;;  %v64_v36 = vsub.s32 0, %v63_v35  ;;  %v161_v54 = vsub.s32 1, %v63_v35 }
  0x12   :  { %389 = vmatprep.mubr.msk.f32.mxu0 %vm508_vm0, %v507_v0  ;;  %398 = vmatpush3.msra.mxu1 %v43_v4  ;;  %v35_v14 = vld [vmem:[#allocation2 + $0x38] sm:$0xff]  ;;  %v34_v15 = vld [vmem:[#allocation2 + $0x30] sm:$0xff]  ;;  %v33_v16 = vld [vmem:[#allocation2 + $0x28] sm:$0xff] }
  0x13   :  { %436 = vmatprep.subr.mxu0 %v507_v0  ;;  %399 = vmatprep.subr.mxu1 %v507_v0  ;;  %v32_v17 = vld [vmem:[#allocation2 + $0x20] sm:$0xff]  ;;  %v31_v18 = vld [vmem:[#allocation2 + $0x18] sm:$0xff]  ;;  %v30_v19 = vld [vmem:[#allocation2 + $0x10] sm:$0xff] }
  0x14   :  { %400 = vmatpush3.msra.mxu1 %v42_v6  ;;  %v29_v20 = vld [vmem:[#allocation2 + $0x8] sm:$0xff]  ;;  %v60_v21 = vld [vmem:[#allocation2 + $0x100] sm:$0xff]  ;;  %v59_v22 = vld [vmem:[#allocation2 + $0xf8] sm:$0xff] }
  0x15   :  { %390 = vmatmul.mubr.msk.f32.gmra.mxu0 %vm66_vm1, %v26_v5  ;;  %401 = vmatprep.subr.mxu1 %v507_v0  ;;  %v58_v23 = vld [vmem:[#allocation2 + $0xf0] sm:$0xff]  ;;  %v57_v24 = vld [vmem:[#allocation2 + $0xe8] sm:$0xff]  ;;  %v56_v25 = vld [vmem:[#allocation2 + $0xe0] sm:$0xff]  ;;  %v248_v5 = vsub.s32 2, %v63_v35 }
  0x16   :  { %392 = vmatprep.mubr.msk.f32.mxu0 %vm508_vm0, %v507_v0  ;;  %402 = vmatpush3.msra.mxu1 %v41_v7  ;;  %v55_v26 = vld [vmem:[#allocation2 + $0xd8] sm:$0xff]  ;;  %v54_v27 = vld [vmem:[#allocation2 + $0xd0] sm:$0xff]  ;;  %v53_v28 = vld [vmem:[#allocation2 + $0xc8] sm:$0xff] }
  0x17   :  { %403 = vmatprep.subr.mxu1 %v507_v0  ;;  %437 = vmatpush3.msra.mxu0 %v60_v21  ;;  %v52_v29 = vld [vmem:[#allocation2 + $0xc0] sm:$0xff]  ;;  %v51_v30 = vld [vmem:[#allocation2 + $0xb8] sm:$0xff]  ;;  %v50_v31 = vld [vmem:[#allocation2 + $0xb0] sm:$0xff] }
  0x18   :  { %404 = vmatpush3.msra.mxu1 %v40_v9  ;;  %438 = vmatprep.subr.mxu0 %v507_v0  ;;  %v49_v32 = vld [vmem:[#allocation2 + $0xa8] sm:$0xff]  ;;  %v48_v33 = vld [vmem:[#allocation2 + $0xa0] sm:$0xff]  ;;  %v47_v51 = vld [vmem:[#allocation2 + $0x98] sm:$0xff] }
  0x19   :  { %393 = vmatmul.mubr.msk.f32.gmra.mxu0 %vm66_vm1, %v27_v8  ;;  %405 = vmatprep.subr.mxu1 %v507_v0  ;;  %v61_v37 = vld [vmem:[#allocation2 + $0x108] sm:$0xff]  ;;  %v46_v52 = vld [vmem:[#allocation2 + $0x90] sm:$0xff] }
  0x1a   :  { %468 = vmatprep.mubr.msk.f32.mxu0 %vm508_vm0, %v507_v0  ;;  %406 = vmatpush3.msra.mxu1 %v39_v10  ;;  %v65_v38 = vrot.slane %v61_v37, %v64_v36  ;;  %v45_v53 = vld [vmem:[#allocation2 + $0x88] sm:$0xff]  ;;  %v162_v55 = vrot.slane %v61_v37, %v161_v54  ;;  %v249_v6 = vrot.slane %v61_v37, %v248_v5 }
  0x1b   :  { %407 = vmatprep.subr.mxu1 %v507_v0  ;;  %439 = vmatpush3.msra.mxu0 %v59_v22 }
  0x1c   :  { %408 = vmatpush3.msra.mxu1 %v38_v11  ;;  %440 = vmatprep.subr.mxu0 %v507_v0 }
  0x1d   :  { %409 = vmatprep.subr.mxu1 %v507_v0  ;;  %441 = vmatpush3.msra.mxu0 %v58_v23 }
  0x1e   :  { %410 = vmatpush3.msra.mxu1 %v37_v12  ;;  %442 = vmatprep.subr.mxu0 %v507_v0 }
  0x1f   :  { %411 = vmatprep.subr.mxu1 %v507_v0  ;;  %443 = vmatpush3.msra.mxu0 %v57_v24 }
  0x20   :  { %412 = vmatpush3.msra.mxu1 %v36_v13  ;;  %444 = vmatprep.subr.mxu0 %v507_v0 }
  0x21   :  { %413 = vmatprep.subr.mxu1 %v507_v0  ;;  %445 = vmatpush3.msra.mxu0 %v56_v25 }
  0x22   :  { %414 = vmatpush3.msra.mxu1 %v35_v14  ;;  %446 = vmatprep.subr.mxu0 %v507_v0 }
  0x23   :  { %415 = vmatprep.subr.mxu1 %v507_v0  ;;  %447 = vmatpush3.msra.mxu0 %v55_v26 }
  0x24   :  { %416 = vmatpush3.msra.mxu1 %v34_v15  ;;  %448 = vmatprep.subr.mxu0 %v507_v0 }
  0x25   :  { %417 = vmatprep.subr.mxu1 %v507_v0  ;;  %449 = vmatpush3.msra.mxu0 %v54_v27 }
  0x26   :  { %418 = vmatpush3.msra.mxu1 %v33_v16  ;;  %450 = vmatprep.subr.mxu0 %v507_v0 }
  0x27   :  { %419 = vmatprep.subr.mxu1 %v507_v0  ;;  %451 = vmatpush3.msra.mxu0 %v53_v28 }
  0x28   :  { %420 = vmatpush3.msra.mxu1 %v32_v17  ;;  %452 = vmatprep.subr.mxu0 %v507_v0 }
  0x29   :  { %421 = vmatprep.subr.mxu1 %v507_v0  ;;  %453 = vmatpush3.msra.mxu0 %v52_v29 }
  0x2a   :  { %422 = vmatpush3.msra.mxu1 %v31_v18  ;;  %454 = vmatprep.subr.mxu0 %v507_v0 }
  0x2b   :  { %423 = vmatprep.subr.mxu1 %v507_v0  ;;  %455 = vmatpush3.msra.mxu0 %v51_v30 }
  0x2c   :  { %424 = vmatpush3.msra.mxu1 %v30_v19  ;;  %456 = vmatprep.subr.mxu0 %v507_v0 }
  0x2d   :  { %425 = vmatprep.subr.mxu1 %v507_v0  ;;  %457 = vmatpush3.msra.mxu0 %v50_v31 }
  0x2e   :  { %426 = vmatpush3.msra.mxu1 %v29_v20  ;;  %458 = vmatprep.subr.mxu0 %v507_v0 }
  0x2f   :  { %459 = vmatpush3.msra.mxu0 %v49_v32 }
  0x30   :  { %460 = vmatprep.subr.mxu0 %v507_v0 }
  0x31   :  { %461 = vmatpush3.msra.mxu0 %v48_v33 }
  0x32   :  { %462 = vmatprep.subr.mxu0 %v507_v0 }
  0x33   :  { %463 = vmatpush3.msra.mxu0 %v47_v51 }
  0x34   :  { %464 = vmatprep.subr.mxu0 %v507_v0 }
  0x35   :  { %465 = vmatpush3.msra.mxu0 %v46_v52 }
  0x36   :  { %466 = vmatprep.subr.mxu0 %v507_v0 }
  0x37   :  { %467 = vmatpush3.msra.mxu0 %v45_v53 }
  0xd1   :  { %v142_v39 = vpop.f32.mrf.mxu0 }
  0xd2   :  { %v143_v40 = vadd.f32 %v142_v39, %v65_v38 }
  0xd3   :  { %v388_v41 = vpop.f32.mrf.mxu0 }
  0xd4   :  { %v156_v42 = vmax.f32 %v143_v40, 0.0 }
  0xd5   :  { %v147_v43 = vpop.f32.mrf.mxu0 }
  0xd6   :  { %v148_v44 = vadd.f32 %v147_v43, %v65_v38  ;;  %428 = vmatmul.mubr.f32.vlgmr.msra.gmra.mxu1 %v156_v42 }
  0xd7   :  { %v391_v45 = vpop.f32.mrf.mxu0  ;;  %430 = vmatprep.mubr.msk.f32.mxu1 %vm508_vm0, %v507_v0 }
  0xd8   :  { %v157_v46 = vmax.f32 %v148_v44, 0.0 }
  0xd9   :  { %v152_v47 = vpop.f32.mrf.mxu0 }
  0xda   :  { %v153_v48 = vadd.f32 %v152_v47, %v65_v38  ;;  %431 = vmatmul.mubr.f32.gmra.mxu1 %v157_v46 }
  0xdb   :  { %v394_v49 = vpop.f32.mrf.mxu0  ;;  %433 = vmatprep.mubr.msk.f32.mxu1 %vm508_vm0, %v507_v0 }
  0xdc   :  { %v158_v50 = vmax.f32 %v153_v48, 0.0 }
  0xde   :  { %434 = vmatmul.mubr.f32.gmra.mxu1 %v158_v50 }
 0x196   :  { %v229_v56 = vpop.f32.mrf.mxu1 }
 0x197   :  { %v230_v57 = vadd.f32 %v229_v56, %v162_v55 }
 0x198   :  { %v429_v58 = vpop.f32.mrf.mxu1 }
 0x199   :  { %v243_v59 = vmax.f32 %v230_v57, 0.0 }
 0x19a   :  { %v234_v60 = vpop.f32.mrf.mxu1 }
 0x19b   :  { %v235_v61 = vadd.f32 %v234_v60, %v162_v55  ;;  %469 = vmatmul.mubr.f32.vlgmr.msra.gmra.mxu0 %v243_v59 }
 0x19c   :  { %v432_v62 = vpop.f32.mrf.mxu1  ;;  %471 = vmatprep.mubr.msk.f32.mxu0 %vm508_vm0, %v507_v0 }
 0x19d   :  { %v244_v63 = vmax.f32 %v235_v61, 0.0 }
 0x19e   :  { %v239_v1 = vpop.f32.mrf.mxu1 }
 0x19f   :  { %v240_v2 = vadd.f32 %v239_v1, %v162_v55  ;;  %472 = vmatmul.mubr.f32.gmra.mxu0 %v244_v63 }
 0x1a0   :  { %v435_v3 = vpop.f32.mrf.mxu1  ;;  %474 = vmatprep.mubr.msk.f32.mxu0 %vm508_vm0, %v507_v0 }
 0x1a1   :  { %v245_v4 = vmax.f32 %v240_v2, 0.0 }
 0x1a3   :  { %475 = vmatmul.mubr.f32.gmra.mxu0 %v245_v4 }
 0x25b   :  { %v316_v7 = vpop.f32.mrf.mxu0 }
 0x25c   :  { %v317_v8 = vadd.f32 %v316_v7, %v249_v6 }
 0x25d   :  { %v470_v9 = vpop.f32.mrf.mxu0 }
 0x25e   :  { %331 = vst.msk [vmem:[%s601_s2] sm:$0xff] %vm330_vm2, %v317_v8 }
 0x25f   :  { %v321_v10 = vpop.f32.mrf.mxu0 }
 0x260   :  { %v322_v11 = vadd.f32 %v321_v10, %v249_v6 }
 0x261   :  { %v473_v12 = vpop.f32.mrf.mxu0 }
 0x262   :  { %332 = vst.msk [vmem:[%s601_s2 + $0x8] sm:$0xff] %vm330_vm2, %v322_v11 }
 0x263   :  { %v326_v0 = vpop.f32.mrf.mxu0 }
 0x264   :  { %v327_v13 = vadd.f32 %v326_v0, %v249_v6 }
 0x265   :  { %v476_v14 = vpop.f32.mrf.mxu0 }
 0x266   :  { %333 = vst.msk [vmem:[%s601_s2 + $0x10] sm:$0xff] %vm330_vm2, %v327_v13 }
 0x267   :  { %338 = vsyncpa [#allocation3], 1 }

</bundles_post_ra>
